<compile_context>
chip_gen: v6e
topology: v6e:2x2x1
jax: 0.10.0
libtpu: 0.0.40
codegen_flags: <defaults>
</compile_context>

<pallas_src>
import functools
import math
import random

import numpy as np

import jax
import jax.numpy as jnp
from jax.experimental import pallas as pl
from jax.experimental.pallas import tpu as pltpu


# ----------------------------------------------------------------------------
# small host helpers
# ----------------------------------------------------------------------------
def _rows_per_tile(h, w, target_lanes):
    """Rows r such that r | h and (r*w) % 128 == 0; largest with r*w <= target_lanes."""
    valid = [r for r in range(1, h + 1) if h % r == 0 and (r * w) % 128 == 0]
    if not valid:
        return h                         # single full-size tile (full-dim block is legal)
    fitting = [r for r in valid if r * w <= target_lanes]
    return max(fitting) if fitting else min(valid)


@functools.lru_cache(maxsize=None)
def _base_grid(h, w):
    oy, ox = np.meshgrid(np.arange(h, dtype=np.float64),
                         np.arange(w, dtype=np.float64), indexing="ij")
    return oy, ox


@functools.lru_cache(maxsize=None)
def _pixel_coords(h, w):
    iy = np.repeat(np.arange(h, dtype=np.float32), w).reshape(h * w, 1)
    ix = np.tile(np.arange(w, dtype=np.float32), h).reshape(h * w, 1)
    return jnp.asarray(iy), jnp.asarray(ix)


# ----------------------------------------------------------------------------
# RandomRotation kernel: band-sparse nearest-neighbour indicator matmul
#   out[bc, o] = sum_i img[bc, i] * [round_src_row(o) == row(i)] * [round_src_col(o) == col(i)]
# Only the +-3deg row band of the image is visited thanks to the data-dependent
# (scalar-prefetched) k index; the output block is resident across k and accumulated
# into directly (no scratch).
# ----------------------------------------------------------------------------
def _rot_warp_kernel(kstart_ref, sy_ref, sx_ref, iy_ref, ix_ref, img_ref, out_ref):
    del kstart_ref                        # only used by the index_maps
    k = pl.program_id(1)
    # (1, tn) vs (tk, 1) broadcast -> (tk, tn) 0/1 indicator.  All values are exact
    # integers in f32, so the equality and the f32 matmul copy pixels bit-exactly
    # (out-of-bounds sources match nothing -> fill = 0).
    match = (sy_ref[...] == iy_ref[...]) & (sx_ref[...] == ix_ref[...])
    wt = jnp.where(match, 1.0, 0.0).astype(jnp.float32)
    partial = jnp.dot(img_ref[...], wt, preferred_element_type=jnp.float32)

    @pl.when(k == 0)
    def _():
        out_ref[...] = partial

    @pl.when(k > 0)
    def _():
        out_ref[...] += partial


@functools.lru_cache(maxsize=None)
def _build_rot_warp(bc, hw, tn, tk, n_tiles, k_band):
    grid_spec = pltpu.PrefetchScalarGridSpec(
        num_scalar_prefetch=1,            # kstart: per-output-tile first input k-tile
        grid=(n_tiles, k_band),
        in_specs=[
            pl.BlockSpec((1, tn), lambda n, k, ks: (0, n)),           # rounded source rows
            pl.BlockSpec((1, tn), lambda n, k, ks: (0, n)),           # rounded source cols
            pl.BlockSpec((tk, 1), lambda n, k, ks: (ks[n] + k, 0)),   # input-pixel rows
            pl.BlockSpec((tk, 1), lambda n, k, ks: (ks[n] + k, 0)),   # input-pixel cols
            pl.BlockSpec((bc, tk), lambda n, k, ks: (0, ks[n] + k)),  # image (band only)
        ],
        out_specs=pl.BlockSpec((bc, tn), lambda n, k, ks: (0, n)),
    )
    fn = pl.pallas_call(
        _rot_warp_kernel,
        out_shape=jax.ShapeDtypeStruct((bc, hw), jnp.float32),
        grid_spec=grid_spec,
        compiler_params=pltpu.CompilerParams(
            # TODO(synk): on v7x, sharding a BC grid axis across the two cores instead of
            # the output axis would halve duplicated image reads for very large batches.
            dimension_semantics=("parallel", "arbitrary"),
            vmem_limit_bytes=48 * 1024 * 1024),
    )
    return jax.jit(fn)


def _rotate_nearest(x, angle_deg, lanes_out, lanes_in):
    B, C, H, W = x.shape
    BC, hw = B * C, H * W
    rn = _rows_per_tile(H, W, lanes_out)           # output rows per n-tile
    rk = _rows_per_tile(H, W, lanes_in)            # input rows per k-tile
    tn, tk = rn * W, rk * W
    n_tiles, total_k = hw // tn, hw // tk

    a = math.radians(angle_deg)
    oy, ox = _base_grid(H, W)
    cy, cx = (H - 1) * 0.5, (W - 1) * 0.5
    sx = np.cos(a) * (ox - cx) + np.sin(a) * (oy - cy) + cx
    sy = -np.sin(a) * (ox - cx) + np.cos(a) * (oy - cy) + cy
    syr = np.floor(sy + 0.5).astype(np.float32)    # nearest source row per output pixel
    sxr = np.floor(sx + 0.5).astype(np.float32)    # nearest source col per output pixel

    # Worst-case (over +-3 deg) number of input-row k-tiles any output tile can touch:
    # keeping it call-invariant means one compile per (shape, tiling).
    span = (rn - 1) + math.sin(math.radians(3.0)) * (W - 1) + 2.0
    k_band = min(total_k, int(math.ceil(span / rk)) + 1)

    rows = syr.reshape(n_tiles, rn * W)
    rmin = np.clip(rows.min(axis=1), 0, H - 1)
    rmax = np.clip(rows.max(axis=1), 0, H - 1)
    k_lo = (rmin // rk).astype(np.int64)
    k_hi = (rmax // rk).astype(np.int64)
    k_band = max(k_band, int((k_hi - k_lo + 1).max()))          # safety net (normally a no-op)
    kstart = np.minimum(k_lo, total_k - k_band).astype(np.int32)  # stays in-bounds, covers band

    iy, ix = _pixel_coords(H, W)
    fn = _build_rot_warp(BC, hw, tn, tk, n_tiles, k_band)
    out = fn(jnp.asarray(kstart),
             jnp.asarray(syr.reshape(1, hw)),
             jnp.asarray(sxr.reshape(1, hw)),
             iy, ix,
             x.reshape(BC, hw).astype(jnp.float32))
    return out.reshape(B, C, H, W)


# ----------------------------------------------------------------------------
# RandomResizedCrop kernel: separable bilinear (antialiased) resample.
#   out[bc] = Wy^T @ img[bc] @ Wx   with tiny host-precomputed tent-weight matrices.
# ----------------------------------------------------------------------------
def _sep_resize_kernel(wyt_ref, wx_ref, img_ref, out_ref):
    # img_ref: (1, H, W); wx: (W, res); wyt: (res, H); out: (1, res, res)
    tmp = jnp.dot(img_ref[0, :, :], wx_ref[...], preferred_element_type=jnp.float32)
    out_ref[0, :, :] = jnp.dot(wyt_ref[...], tmp, preferred_element_type=jnp.float32)


@functools.lru_cache(maxsize=None)
def _build_sep_resize(bc, h, w, res):
    fn = pl.pallas_call(
        _sep_resize_kernel,
        out_shape=jax.ShapeDtypeStruct((bc, res, res), jnp.float32),
        grid=(bc,),
        in_specs=[
            pl.BlockSpec((res, h), lambda b: (0, 0)),       # Wy^T (resident)
            pl.BlockSpec((w, res), lambda b: (0, 0)),       # Wx   (resident)
            pl.BlockSpec((1, h, w), lambda b: (b, 0, 0)),   # one image plane
        ],
        out_specs=pl.BlockSpec((1, res, res), lambda b: (b, 0, 0)),
        compiler_params=pltpu.CompilerParams(
            dimension_semantics=("parallel",),
            vmem_limit_bytes=48 * 1024 * 1024),
    )
    return jax.jit(fn)


def _resize_weights(in_size, offset, crop_size, out_size):
    """(in_size, out_size) tent weights for crop [offset, offset+crop_size) -> out_size."""
    scale = crop_size / out_size
    support = max(scale, 1.0)            # antialias widening on true downscales
    centers = offset + np.clip((np.arange(out_size, dtype=np.float64) + 0.5) * scale - 0.5,
                               0.0, crop_size - 1.0)
    rows = np.arange(in_size, dtype=np.float64)[:, None]
    wt = np.maximum(0.0, 1.0 - np.abs(centers[None, :] - rows) / support)
    wt = wt / np.maximum(wt.sum(axis=0, keepdims=True), 1e-12)
    # TODO(synk): torchvision's antialiased triangle filter differs marginally in edge
    # normalisation; results are visually identical but not bit-matched.
    return wt.astype(np.float32)


def _resized_crop(x, i, j, h, w, res):
    B, C, H, W = x.shape
    BC = B * C
    wy = _resize_weights(H, i, h, res)   # (H, res)
    wx = _resize_weights(W, j, w, res)   # (W, res)
    fn = _build_sep_resize(BC, H, W, res)
    out = fn(jnp.asarray(np.ascontiguousarray(wy.T)), jnp.asarray(wx),
             x.reshape(BC, H, W).astype(jnp.float32))
    return out.reshape(B, C, res, res)


# ----------------------------------------------------------------------------
# ColorJitter + gaussian-noise kernel (per-image block, (H, W) as the dense tile dims)
# ----------------------------------------------------------------------------
def _grayscale(x):
    # x: (1, 3, H, W); torchvision rgb_to_grayscale coefficients
    return 0.2989 * x[:, 0:1] + 0.587 * x[:, 1:2] + 0.114 * x[:, 2:3]


def _adjust_hue(x, hue_factor):
    r, g, b = x[:, 0:1], x[:, 1:2], x[:, 2:3]
    maxc = jnp.maximum(jnp.maximum(r, g), b)
    minc = jnp.minimum(jnp.minimum(r, g), b)
    eqc = maxc == minc
    cr = maxc - minc
    ones = jnp.ones_like(maxc)
    # one EUP reciprocal each instead of 4 VPU divides per pixel
    inv_max = pl.reciprocal(jnp.where(eqc, ones, maxc), approx=True)
    inv_cr = pl.reciprocal(jnp.where(eqc, ones, cr), approx=True)
    s = cr * inv_max
    rc = (maxc - r) * inv_cr
    gc = (maxc - g) * inv_cr
    bc = (maxc - b) * inv_cr
    hr = jnp.where(maxc == r, bc - gc, 0.0)
    hg = jnp.where((maxc == g) & (maxc != r), 2.0 + rc - bc, 0.0)
    hb = jnp.where((maxc != g) & (maxc != r), 4.0 + gc - rc, 0.0)
    h = (hr + hg + hb) * (1.0 / 6.0) + 1.0
    h = h - jnp.floor(h)                       # fmod(., 1.0)
    h = h + hue_factor
    h = h - jnp.floor(h)                       # (h + hue_factor) % 1.0
    v = maxc
    i = jnp.minimum(jnp.floor(h * 6.0), 5.0)
    f = h * 6.0 - jnp.floor(h * 6.0)
    p = v * (1.0 - s)
    q = v * (1.0 - s * f)
    t = v * (1.0 - s * (1.0 - f))

    def sel(a0, a1, a2, a3, a4, a5):
        return jnp.where(i == 0.0, a0,
               jnp.where(i == 1.0, a1,
               jnp.where(i == 2.0, a2,
               jnp.where(i == 3.0, a3,
               jnp.where(i == 4.0, a4, a5)))))

    r2 = sel(v, q, p, p, t, v)
    g2 = sel(t, v, v, q, p, p)
    b2 = sel(p, p, t, v, v, q)
    return jnp.concatenate([r2, g2, b2], axis=1)


def _color_noise_kernel(factors_ref, x_ref, *rest, order, apply_color, apply_noise):
    if apply_noise:
        noise_ref, out_ref = rest
    else:
        (out_ref,) = rest
    x = x_ref[...]                              # (1, 3, H, W) f32 -- one image per step
    if apply_color:
        bf = factors_ref[0]
        cf = factors_ref[1]
        sf = factors_ref[2]
        hf = factors_ref[3]
        for op in order:                        # torchvision applies in a random order
            if op == 0:                         # brightness: blend(x, 0, bf)
                x = jnp.clip(x * bf, 0.0, 1.0)
            elif op == 1:                       # contrast: blend with per-image gray mean
                mean = jnp.mean(_grayscale(x), axis=(-2, -1), keepdims=True)
                x = jnp.clip(cf * x + (1.0 - cf) * mean, 0.0, 1.0)
            elif op == 2:                       # saturation: blend with grayscale
                x = jnp.clip(sf * x + (1.0 - sf) * _grayscale(x), 0.0, 1.0)
            else:                               # hue shift via RGB<->HSV
                x = _adjust_hue(x, hf)
    if apply_noise:
        x = x + noise_ref[...].astype(jnp.float32) * 0.1
    out_ref[...] = x


@functools.lru_cache(maxsize=None)
def _build_color(b, c, h, w, order, apply_color, apply_noise):
    kernel = functools.partial(_color_noise_kernel, order=order,
                               apply_color=apply_color, apply_noise=apply_noise)
    in_specs = [
        pl.BlockSpec(memory_space=pltpu.MemorySpace.SMEM),       # jitter factors (4,)
        pl.BlockSpec((1, c, h, w), lambda i: (i, 0, 0, 0)),      # image
    ]
    if apply_noise:
        in_specs.append(pl.BlockSpec((1, c, h, w), lambda i: (i, 0, 0, 0)))  # bf16 noise
    # TODO(synk): for very large images (>512px f32) tile the spatial axes and feed the
    # contrast grayscale mean from a cheap pre-pass instead of a whole-image block.
    fn = pl.pallas_call(
        kernel,
        out_shape=jax.ShapeDtypeStruct((b, c, h, w), jnp.float32),
        grid=(b,),
        in_specs=in_specs,
        out_specs=pl.BlockSpec((1, c, h, w), lambda i: (i, 0, 0, 0)),
        compiler_params=pltpu.CompilerParams(
            dimension_semantics=("parallel",),
            vmem_limit_bytes=48 * 1024 * 1024),
    )
    return jax.jit(fn)


# ----------------------------------------------------------------------------
# Host-side parameter sampling (mirrors torchvision RandomResizedCrop.get_params)
# ----------------------------------------------------------------------------
def _sample_crop(rng, height, width, scale, ratio):
    area = height * width
    log_ratio = (math.log(ratio[0]), math.log(ratio[1]))
    for _ in range(10):
        target_area = area * rng.uniform(*scale)
        aspect = math.exp(rng.uniform(*log_ratio))
        w = int(round(math.sqrt(target_area * aspect)))
        h = int(round(math.sqrt(target_area / aspect)))
        if 0 < w <= width and 0 < h <= height:
            i = rng.randint(0, height - h)
            j = rng.randint(0, width - w)
            return i, j, h, w
    # torchvision fallback: central crop bounded by the ratio range
    in_ratio = width / height
    if in_ratio < ratio[0]:
        w = width
        h = int(round(w / ratio[0]))
    elif in_ratio > ratio[1]:
        h = height
        w = int(round(h * ratio[1]))
    else:
        w, h = width, height
    return (height - h) // 2, (width - w) // 2, h, w


class Augmentation:
    """Label-invariant augmentations; hot paths implemented as Pallas TPU kernels."""

    def __init__(self, res, *, rot_lanes_out=1024, rot_lanes_in=2048):
        self.res = res
        self.rot_lanes_out = rot_lanes_out
        self.rot_lanes_in = rot_lanes_in

    def __call__(self, x, seed=0, force_all=False):
        rng = random.Random(seed)
        x = jnp.asarray(x, jnp.float32)
        B, C, H, W = x.shape
        assert C == 3, "ColorJitter path assumes RGB (the original in-place slice implies C == 3)"

        # --- RandomRotation(3): nearest interpolation, fill=0 (torchvision defaults)
        gate_rot = rng.random() < 0.5
        angle = rng.uniform(-3.0, 3.0)
        if force_all or gate_rot:
            # TODO(synk): rotation sign convention may be mirrored vs torchvision; the
            # distribution is identical for the symmetric +-3 degree range.
            x = _rotate_nearest(x, angle, self.rot_lanes_out, self.rot_lanes_in)

        # --- RandomResizedCrop(res, scale=(0.8, 1.0)): bilinear + antialias (separable)
        gate_crop = rng.random() < 0.2
        if force_all or gate_crop:
            B, C, H, W = x.shape
            i, j, h, w = _sample_crop(rng, H, W, scale=(0.8, 1.0),
                                      ratio=(3.0 / 4.0, 4.0 / 3.0))
            x = _resized_crop(x, i, j, h, w, self.res)

        # --- ColorJitter(0.5, 0.5, 0.4, 0.2) + gaussian noise (std 0.1)
        gate_color = rng.random() < 0.5
        bf = rng.uniform(0.5, 1.5)
        cf = rng.uniform(0.5, 1.5)
        sf = rng.uniform(0.6, 1.4)
        hf = rng.uniform(-0.2, 0.2)
        order = list(range(4))
        rng.shuffle(order)
        order = tuple(order)
        gate_noise = rng.random() < 0.3
        apply_color = force_all or gate_color
        apply_noise = force_all or gate_noise
        if apply_color or apply_noise:
            B, C, H, W = x.shape
            factors = jnp.asarray([bf, cf, sf, hf], jnp.float32)
            args = [factors, x]
            if apply_noise:
                # TODO(synk): on real TPU this could use pltpu.prng_seed/stateful_normal
                # to skip the HBM noise read, but that primitive has no interpret/CPU
                # lowering, so noise is drawn host-side (bf16 to halve the DMA).
                noise = jax.random.normal(jax.random.PRNGKey(seed), x.shape,
                                          dtype=jnp.bfloat16)
                args.append(noise)
            fn = _build_color(B, C, H, W, order, apply_color, apply_noise)
            x = fn(*args)
        return x


if __name__ == "__main__":
    key = jax.random.PRNGKey(0)
    x = jax.random.uniform(key, (2, 3, 16, 16), dtype=jnp.float32)  # NCHW, values in [0, 1)

    # Small lane targets so the smoke test exercises the banded / accumulated rotation
    # path (grid = (2, 2)) even at 16x16; defaults (1024 / 2048) are for real images.
    aug = Augmentation(res=16, rot_lanes_out=128, rot_lanes_in=128)
    # force_all=True so every Pallas kernel path (rotate, crop, color, noise) executes.
    y = aug(x, seed=0, force_all=True)
    y = jax.block_until_ready(y)

    assert y.shape == x.shape and y.dtype == jnp.float32
    assert bool(jnp.all(jnp.isfinite(y)))
    print("KERNEL_OK")
</pallas_src>

<mosaic_0001>
module attributes {stable_mosaic.version = 11 : i64} {
  func.func @_rot_warp_kernel(%arg0: i32, %arg1: i32, %arg2: memref<2xi32, #tpu.memory_space<smem>>, %arg3: memref<1x128xf32, #tpu.memory_space<vmem>>, %arg4: memref<1x128xf32, #tpu.memory_space<vmem>>, %arg5: memref<128x1xf32, #tpu.memory_space<vmem>>, %arg6: memref<128x1xf32, #tpu.memory_space<vmem>>, %arg7: memref<6x128xf32, #tpu.memory_space<vmem>>, %arg8: memref<6x128xf32, #tpu.memory_space<vmem>>) attributes {dimension_semantics = [#tpu.dimension_semantics<parallel>, #tpu.dimension_semantics<arbitrary>], iteration_bounds = array<i64: 2, 2>, scalar_prefetch = 1 : i64, scratch_operands = 0 : i64, tpu.core_type = #tpu.core_type<tc>, window_params = [{transform_indices = @transform_0, window_bounds = array<i64: 1, 128>}, {transform_indices = @transform_1, window_bounds = array<i64: 1, 128>}, {transform_indices = @transform_2, window_bounds = array<i64: 128, 1>}, {transform_indices = @transform_3, window_bounds = array<i64: 128, 1>}, {transform_indices = @transform_4, window_bounds = array<i64: 6, 128>}, {transform_indices = @transform_5, window_bounds = array<i64: 6, 128>}]} {
    %c0 = arith.constant 0 : index
    %c0_0 = arith.constant 0 : index
    %0 = vector.load %arg3[%c0, %c0_0] : memref<1x128xf32, #tpu.memory_space<vmem>>, vector<1x128xf32>
    %c0_1 = arith.constant 0 : index
    %c0_2 = arith.constant 0 : index
    %1 = vector.load %arg5[%c0_1, %c0_2] : memref<128x1xf32, #tpu.memory_space<vmem>>, vector<128x1xf32>
    %2 = vector.broadcast %0 : vector<1x128xf32> to vector<128x128xf32>
    %3 = vector.broadcast %1 : vector<128x1xf32> to vector<128x128xf32>
    %4 = arith.cmpf oeq, %2, %3 : vector<128x128xf32>
    %c0_3 = arith.constant 0 : index
    %c0_4 = arith.constant 0 : index
    %5 = vector.load %arg4[%c0_3, %c0_4] : memref<1x128xf32, #tpu.memory_space<vmem>>, vector<1x128xf32>
    %c0_5 = arith.constant 0 : index
    %c0_6 = arith.constant 0 : index
    %6 = vector.load %arg6[%c0_5, %c0_6] : memref<128x1xf32, #tpu.memory_space<vmem>>, vector<128x1xf32>
    %7 = vector.broadcast %5 : vector<1x128xf32> to vector<128x128xf32>
    %8 = vector.broadcast %6 : vector<128x1xf32> to vector<128x128xf32>
    %9 = arith.cmpf oeq, %7, %8 : vector<128x128xf32>
    %10 = arith.andi %4, %9 : vector<128x128xi1>
    %cst = arith.constant 1.000000e+00 : f32
    %cst_7 = arith.constant 0.000000e+00 : f32
    %11 = vector.broadcast %cst : f32 to vector<128x128xf32>
    %12 = vector.broadcast %cst_7 : f32 to vector<128x128xf32>
    %13 = arith.select %10, %11, %12 : vector<128x128xi1>, vector<128x128xf32>
    %c0_8 = arith.constant 0 : index
    %c0_9 = arith.constant 0 : index
    %14 = vector.load %arg7[%c0_8, %c0_9] : memref<6x128xf32, #tpu.memory_space<vmem>>, vector<6x128xf32>
    %cst_10 = arith.constant dense<0.000000e+00> : vector<6x128xf32>
    %15 = tpu.matmul %14, %13, %cst_10 {dimension_numbers = #tpu.dot_dimension_numbers<[1], [0], [0], [1], [0, 0, 1, 1], [], []>} : vector<6x128xf32>, vector<128x128xf32>, vector<6x128xf32> -> vector<6x128xf32>
    %c0_i32 = arith.constant 0 : i32
    %16 = arith.cmpi eq, %arg1, %c0_i32 : i32
    %17 = arith.extui %16 : i1 to i32
    %c0_i32_11 = arith.constant 0 : i32
    %18 = arith.cmpi ne, %17, %c0_i32_11 : i32
    scf.if %18 {
      %c0_14 = arith.constant 0 : index
      %c0_15 = arith.constant 0 : index
      %22 = vector.load %arg8[%c0_14, %c0_15] : memref<6x128xf32, #tpu.memory_space<vmem>>, vector<6x128xf32>
      tpu.vector_store %arg8[%c0_14, %c0_15], %15 {strides = array<i32>} : memref<6x128xf32, #tpu.memory_space<vmem>>, vector<6x128xf32>,
    } else {
    }
    %c0_i32_12 = arith.constant 0 : i32
    %19 = arith.cmpi sgt, %arg1, %c0_i32_12 : i32
    %20 = arith.extui %19 : i1 to i32
    %c0_i32_13 = arith.constant 0 : i32
    %21 = arith.cmpi ne, %20, %c0_i32_13 : i32
    scf.if %21 {
      %c0_14 = arith.constant 0 : index
      %c0_15 = arith.constant 0 : index
      %22 = vector.load %arg8[%c0_14, %c0_15] : memref<6x128xf32, #tpu.memory_space<vmem>>, vector<6x128xf32>
      %23 = arith.addf %22, %15 : vector<6x128xf32>
      %c0_16 = arith.constant 0 : index
      %c0_17 = arith.constant 0 : index
      %24 = vector.load %arg8[%c0_16, %c0_17] : memref<6x128xf32, #tpu.memory_space<vmem>>, vector<6x128xf32>
      tpu.vector_store %arg8[%c0_16, %c0_17], %23 {strides = array<i32>} : memref<6x128xf32, #tpu.memory_space<vmem>>, vector<6x128xf32>,
    } else {
    }
    return
  }
  func.func @transform_0(%arg0: i32, %arg1: i32, %arg2: memref<2xi32, #tpu.memory_space<smem>>) -> (i32, i32) {
    %c0_i32 = arith.constant 0 : i32
    %c0_i32_0 = arith.constant 0 : i32
    return %c0_i32, %arg0 : i32, i32
  }
  func.func @transform_1(%arg0: i32, %arg1: i32, %arg2: memref<2xi32, #tpu.memory_space<smem>>) -> (i32, i32) {
    %c0_i32 = arith.constant 0 : i32
    %c0_i32_0 = arith.constant 0 : i32
    return %c0_i32, %arg0 : i32, i32
  }
  func.func @transform_2(%arg0: i32, %arg1: i32, %arg2: memref<2xi32, #tpu.memory_space<smem>>) -> (i32, i32) {
    %0 = arith.index_cast %arg0 : i32 to index
    %1 = memref.load %arg2[%0] : memref<2xi32, #tpu.memory_space<smem>>
    %2 = arith.addi %1, %arg1 : i32
    %c0_i32 = arith.constant 0 : i32
    %c0_i32_0 = arith.constant 0 : i32
    return %2, %c0_i32 : i32, i32
  }
  func.func @transform_3(%arg0: i32, %arg1: i32, %arg2: memref<2xi32, #tpu.memory_space<smem>>) -> (i32, i32) {
    %0 = arith.index_cast %arg0 : i32 to index
    %1 = memref.load %arg2[%0] : memref<2xi32, #tpu.memory_space<smem>>
    %2 = arith.addi %1, %arg1 : i32
    %c0_i32 = arith.constant 0 : i32
    %c0_i32_0 = arith.constant 0 : i32
    return %2, %c0_i32 : i32, i32
  }
  func.func @transform_4(%arg0: i32, %arg1: i32, %arg2: memref<2xi32, #tpu.memory_space<smem>>) -> (i32, i32) {
    %0 = arith.index_cast %arg0 : i32 to index
    %1 = memref.load %arg2[%0] : memref<2xi32, #tpu.memory_space<smem>>
    %2 = arith.addi %1, %arg1 : i32
    %c0_i32 = arith.constant 0 : i32
    %c0_i32_0 = arith.constant 0 : i32
    return %c0_i32, %2 : i32, i32
  }
  func.func @transform_5(%arg0: i32, %arg1: i32, %arg2: memref<2xi32, #tpu.memory_space<smem>>) -> (i32, i32) {
    %c0_i32 = arith.constant 0 : i32
    %c0_i32_0 = arith.constant 0 : i32
    return %c0_i32, %arg0 : i32, i32
  }
}

</mosaic_0001>

<bundles_post_ra>
// kernel: tpu_custom_call.1
= control target key start
LH: loop header
LB: loop body
LE: loop exit
PB: predicated region body
PF: predicated region fallthrough
CT: control target
= control target key end

     0   :  { %s1400_s0 = inlined_call_operand.vmem [shape: s32[2], index: 0, kind: input, shape index: {}]   ;;  %s1401_s1 = inlined_call_operand.vmem [shape: f32[1,256], index: 1, kind: input, shape index: {}]   ;;  %s1402_s2 = inlined_call_operand.vmem [shape: f32[1,256], index: 2, kind: input, shape index: {}]   ;;  %s1403_s3 = inlined_call_operand.vmem [shape: f32[256,1], index: 3, kind: input, shape index: {}]   ;;  %s1404_s4 = inlined_call_operand.vmem [shape: f32[256,1], index: 4, kind: input, shape index: {}]   ;;  %s1405_s5 = inlined_call_operand.vmem [shape: f32[6,256], index: 5, kind: input, shape index: {}]   ;;  %s1406_s6 = inlined_call_operand.hbm [shape: f32[6,256], index: 6, kind: output, shape index: {}]  }
   0x1   :  { %s11_s23 = sshll.u32 %s1400_s0, 4  ;;  %s12_s23 = int_to_ptr.vmem [resolvable:$true] %s11_s23 }
   0x2   :  { %s997_s24 = scalar_lea.vmem %s12_s23, 16  ;;  %p1002_p1 = scmp.lt.s32.totalorder %s12_s23, %s12_s23 }
   0x3   :  { %p998_p0 = scmp.ne.s32.totalorder %s12_s23, %s997_s24  ;;  %p1003_p2 = scmp.lt.s32.totalorder %s997_s24, %s997_s24 }
   0x5   :  { %p1004_p3 = por %p1003_p2, %p1002_p1 }
   0x7   :  { %p1005_p4 = pnand %p1004_p3, %p998_p0 }
   0x9   :  { %1008 = shalt.err (!%p1005_p4)  }
   0xa   :  { %s1105_s25 = smov [#allocation3]  }
   0xb   :  { %14 = dma.vmem_to_smem %s12_s23, 16, %s1105_s25, [#allocation2] }
   0xc   :  { %1067 = dma.done.wait [#allocation2], 16 }
   0xd   :  { %1068 = vsyncadd [#allocation2], 4294967280 }
   0xe   :  { %16 = sfence }
   0xf   :  { %17 = vsyncpa [#allocation5], 0 }
  0x10   :  { %19 = vsyncpa [#allocation5 + $0x1], 0  ;;  %s1149_s26 = smov 0   ;;  %s1151_s27 = smov 0  }
  0x11   :  { %s1153_s0 = smov 0   ;;  %s1155_s28 = smov 0  }
  0x12   :  { %s1157_s29 = smov 0   ;;  %s1159_s30 = smov 0  }
  0x13   :  { %s1161_s7 = smov 0   ;;  %s1163_s8 = smov 0  }
  0x14 LB: > { %s832_s9 = sadd.s32 4294967295, %s1103_s8   ;;  %s833_s10 = sadd.s32 4294967294, %s1103_s8   ;;  %s1103_s8 = sphi %s1163_s8, %s25_s8   ;;  %s1099_s7 = sphi %s1161_s7, %s1415_s7   ;;  %s1095_s30 = sphi %s1159_s30, %s1414_s30   ;;  %s1091_s29 = sphi %s1157_s29, %s1413_s29   ;;  %s1087_s28 = sphi %s1155_s28, %s1412_s28   ;;  %s1083_s0 = sphi %s1153_s0, %s1411_s0   ;;  %s1079_s27 = sphi %s1151_s27, %s1410_s27   ;;  %s1075_s26 = sphi %s1149_s26, %s1409_s26  }
  0x15   : > { %s34_s11 = sadd.s32 1, %s1095_s30  ;;  %s37_s12 = sadd.s32 1, %s1099_s7 }
  0x16   : > { %p35_p5 = scmp.ge.s32.totalorder %s34_s11, 2  ;;  %p196_p6 = scmp.ne.s32.totalorder %s1083_s0, %s1079_s27 }
  0x17   : > { %p197_p7 = scmp.eq.s32.totalorder %s832_s9, 3  ;;  %p202_p9 = scmp.ne.s32.totalorder %s1079_s27, %s1075_s26 }
  0x18   : > { %s1417_s11 = smov (%p35_p5, %s34_s11), 0  ;;  %s1419_s12 = smov (!%p35_p5, %s37_s12), %s1099_s7 }
  0x19   : > { %p1198_p8 = por %p197_p7, %p196_p6  ;;  %p39_p10 = scmp.ge.s32.totalorder %s1419_s12, 2 }
  0x1a   : > { %p203_p11 = scmp.eq.s32.totalorder %s833_s10, 3  ;;  %p836_p12 = scmp.ge.s32.totalorder %s1103_s8, 1 }
  0x1b   : > { %p270_p13 = scmp.lt.s32.totalorder %s1103_s8, 5  ;;  %s1421_s12 = smov (%p39_p10, %s1419_s12), 0 }
  0x1c   : > { %p1208_p0 = por %p203_p11, %p202_p9  ;;  %s183_s15 = ssub.s32 %s1099_s7, %s1421_s12 }
  0x1d   : > { %p271_p1 = pnand %p836_p12, %p270_p13  ;;  %s186_s16 = sadd.s32 1, %s1083_s0 }
  0x1e   : > { %p184_p2 = scmp.eq.s32.totalorder %s183_s15, 0  ;;  %s325_s18 = sld [smem:[#allocation3 + %s1091_s29]] (!%p271_p1) }
  0x1f   : > { %274 = sbr.rel (%p271_p1) target bundleno = 461 (0x1cd), region = 40  ;;  %s335_s19 = sld [smem:[#allocation3 + %s1091_s29]] (!%p271_p1) }
  0x20   : > { %s1216_s17 = scalar_select %p184_p2, %s1083_s0, %s186_s16  }
  0x21   : > { %p319_p5 = scmp.lt.s32.totalorder (!%p271_p1), %s1091_s29, 1  ;;  %p861_p7 = scmp.ne.s32.totalorder (!%p271_p1), %s1087_s28, 0 }
  0x24   : > { %v1106_v0 = vmov 0   ;;  %s326_s20 = sadd.s32 %s1087_s28, %s325_s18  ;;  %v1107_v5 = vmov 0.0   ;;  %vm1108_vm0 = vmmov 0   ;;  %v1109_v40 = vmov 1.0  }
  0x25   : > { %996 = vset.pattern.permute.xlu1 %v1106_v0  ;;  %995 = vset.pattern.permute.xlu0 %v1106_v0  ;;  %s838_s21 = sshll.u32 %s326_s20, 4  ;;  %s336_s22 = sadd.s32 %s1087_s28, %s335_s19 }
  0x26   : > { %p328_p3 = scmp.lt.s32.totalorder %s838_s21, 31  ;;  %s840_s23 = sshll.u32 %s336_s22, 4  ;;  %884 = vmatprep.subr.mxu0 %v1107_v5  ;;  %916 = vmatprep.mubr.msk.f32.mxu0 %vm1108_vm0, %v1107_v5 }
  0x27   : > { %p338_p4 = scmp.lt.s32.totalorder %s840_s23, 31  ;;  %s316_s20 = sand.u32 1, %s1079_s27  }
  0x28   : > { %s1423_s21 = smov (!%p328_p3, %s838_s21), 31 }
  0x29   : > { %s1425_s23 = smov (!%p338_p4, %s840_s23), 31  ;;  %s839_s24 = sshll.u32 %s1423_s21, 3 }
  0x2a   : > { %s1225_s10 = scalar_lea.vmem %s1403_s3, %s839_s24  ;;  %s841_s15 = sshll.u32 %s1425_s23, 3 }
  0x2b   : > { %v369_v1 = vld [vmem:[%s1225_s10 + $0x78] sm:$0xff]  ;;  %v368_v2 = vld [vmem:[%s1225_s10 + $0x70] sm:$0xff]  ;;  %s1232_s19 = scalar_lea.vmem %s1404_s4, %s841_s15  ;;  %s1240_s21 = sshll.u32 %s316_s20, 3  ;;  %v367_v7 = vld [vmem:[%s1225_s10 + $0x68] sm:$0xff] }
  0x2c   : > { %453 = vperm.xlu0 %995, %v369_v1   ;;  %448 = vperm.xlu1 %996, %v368_v2   ;;  %v488_v3 = vld [vmem:[%s1232_s19 + $0x78] sm:$0xff]  ;;  %v487_v4 = vld [vmem:[%s1232_s19 + $0x70] sm:$0xff]  ;;  %v486_v6 = vld [vmem:[%s1232_s19 + $0x68] sm:$0xff]  ;;  %s320_s22 = scalar_select %p319_p5, %s1091_s29, 1 }
  0x2d   : > { %v485_v8 = vld [vmem:[%s1232_s19 + $0x60] sm:$0xff]  ;;  %v484_v10 = vld [vmem:[%s1232_s19 + $0x58] sm:$0xff]  ;;  %v483_v12 = vld [vmem:[%s1232_s19 + $0x50] sm:$0xff] }
  0x2e   : > { %v366_v9 = vld [vmem:[%s1225_s10 + $0x60] sm:$0xff]  ;;  %v365_v11 = vld [vmem:[%s1225_s10 + $0x58] sm:$0xff]  ;;  %v364_v13 = vld [vmem:[%s1225_s10 + $0x50] sm:$0xff]  ;;  %s321_s25 = scalar_lea.vmem %s1401_s1, %s320_s22  ;;  %s324_s16 = scalar_lea.vmem %s1402_s2, %s320_s22 }
  0x2f   : > { %v482_v14 = vld [vmem:[%s1232_s19 + $0x48] sm:$0xff]  ;;  %v481_v16 = vld [vmem:[%s1232_s19 + $0x40] sm:$0xff]  ;;  %v480_v18 = vld [vmem:[%s1232_s19 + $0x38] sm:$0xff] }
  0x30   : > { %572 = vperm.xlu0 %995, %v488_v3   ;;  %567 = vperm.xlu1 %996, %v487_v4   ;;  %v363_v15 = vld [vmem:[%s1225_s10 + $0x48] sm:$0xff]  ;;  %v362_v17 = vld [vmem:[%s1225_s10 + $0x40] sm:$0xff]  ;;  %v361_v19 = vld [vmem:[%s1225_s10 + $0x38] sm:$0xff] }
  0x31   : > { %v479_v20 = vld [vmem:[%s1232_s19 + $0x30] sm:$0xff]  ;;  %v478_v22 = vld [vmem:[%s1232_s19 + $0x28] sm:$0xff]  ;;  %v477_v24 = vld [vmem:[%s1232_s19 + $0x20] sm:$0xff] }
  0x32   : > { %v360_v21 = vld [vmem:[%s1225_s10 + $0x30] sm:$0xff]  ;;  %v359_v23 = vld [vmem:[%s1225_s10 + $0x28] sm:$0xff]  ;;  %v358_v25 = vld [vmem:[%s1225_s10 + $0x20] sm:$0xff] }
  0x33   : > { %v476_v26 = vld [vmem:[%s1232_s19 + $0x18] sm:$0xff]  ;;  %v475_v28 = vld [vmem:[%s1232_s19 + $0x10] sm:$0xff]  ;;  %v474_v30 = vld [vmem:[%s1232_s19 + $0x8] sm:$0xff] }
  0x34   : > { %562 = vperm.xlu1 %996, %v486_v6   ;;  %443 = vperm.xlu0 %995, %v367_v7   ;;  %v357_v27 = vld [vmem:[%s1225_s10 + $0x18] sm:$0xff]  ;;  %v356_v29 = vld [vmem:[%s1225_s10 + $0x10] sm:$0xff]  ;;  %v355_v31 = vld [vmem:[%s1225_s10 + $0x8] sm:$0xff] }
  0x35   : > { %v473_v32 = vld [vmem:[%s1232_s19] sm:$0xff] }
  0x36   : > { %v354_v33 = vld [vmem:[%s1225_s10] sm:$0xff]  ;;  %s345_s10 = sld [smem:[#allocation3 + %s1091_s29]] }
  0x37   : > { %v1279_v36 = vld [vmem:[%s321_s25] ss:$0 sm:$0xff]  ;;  %s318_s25 = scalar_lea.vmem [#allocation4], %s1240_s21 }
  0x38   : > { %557 = vperm.xlu1 %996, %v485_v8   ;;  %438 = vperm.xlu0 %995, %v366_v9   ;;  %v1281_v37 = vld [vmem:[%s324_s16] ss:$0 sm:$0xff] }
  0x3c   : > { %552 = vperm.xlu1 %996, %v484_v10   ;;  %433 = vperm.xlu0 %995, %v365_v11   ;;  %s346_s18 = sadd.s32 %s1087_s28, %s345_s10 }
  0x3d   : > { %p347_p6 = scmp.lt.s32.totalorder %s346_s18, 1 }
  0x3f   : > { %s1427_s18 = smov (!%p347_p6, %s346_s18), 1 }
  0x40   : > { %547 = vperm.xlu1 %996, %v483_v12   ;;  %428 = vperm.xlu0 %995, %v364_v13   ;;  %s842_s19 = sshll.u32 %s1427_s18, 3 }
  0x41   : > { %s350_s24 = scalar_lea.vmem %s1405_s5, %s842_s19 }
  0x42   : > { %v623_v6 = vld [vmem:[%s350_s24] sm:$0x3f] }
  0x44   : > { %542 = vperm.xlu1 %996, %v482_v14   ;;  %423 = vperm.xlu0 %995, %v363_v15  }
  0x48   : > { %537 = vperm.xlu1 %996, %v481_v16   ;;  %418 = vperm.xlu0 %995, %v362_v17  }
  0x4c   : > { %532 = vperm.xlu1 %996, %v480_v18   ;;  %413 = vperm.xlu0 %995, %v361_v19  }
  0x50   : > { %527 = vperm.xlu1 %996, %v479_v20   ;;  %408 = vperm.xlu0 %995, %v360_v21  }
  0x54   : > { %522 = vperm.xlu1 %996, %v478_v22   ;;  %403 = vperm.xlu0 %995, %v359_v23  }
  0x58   : > { %517 = vperm.xlu1 %996, %v477_v24   ;;  %398 = vperm.xlu0 %995, %v358_v25  }
  0x5c   : > { %512 = vperm.xlu1 %996, %v476_v26   ;;  %393 = vperm.xlu0 %995, %v357_v27  }
  0x60   : > { %507 = vperm.xlu1 %996, %v475_v28   ;;  %388 = vperm.xlu0 %995, %v356_v29  }
  0x64   : > { %502 = vperm.xlu1 %996, %v474_v30   ;;  %383 = vperm.xlu0 %995, %v355_v31  }
  0x68   : > { %497 = vperm.xlu1 %996, %v473_v32   ;;  %378 = vperm.xlu0 %995, %v354_v33  }
  0xa7   : > { %v454_v34 = vpop.permute.xlu0 %453  ;;  %v449_v35 = vpop.permute.xlu1 %448 }
  0xa8   : > { %vm471_vm1 = vcmp.eq.f32.partialorder %v1279_v36, %v454_v34  ;;  %vm470_vm5 = vcmp.eq.f32.partialorder %v1279_v36, %v449_v35 }
  0xab   : > { %v573_v38 = vpop.permute.xlu0 %572  ;;  %v568_v39 = vpop.permute.xlu1 %567 }
  0xac   : > { %vm590_vm2 = vcmp.eq.f32.partialorder %v1281_v37, %v573_v38  ;;  %vm589_vm3 = vcmp.eq.f32.partialorder %v1281_v37, %v568_v39 }
  0xad   : > { %vm606_vm4 = vmand %vm471_vm1, %vm590_vm2 }
  0xae   : > { %885 = vmatpush3.msk.msra.mxu0 %vm606_vm4, %v1109_v40  ;;  %vm605_vm6 = vmand %vm470_vm5, %vm589_vm3 }
  0xaf   : > { %v563_v41 = vpop.permute.xlu1 %562  ;;  %v444_v42 = vpop.permute.xlu0 %443  ;;  %886 = vmatprep.subr.mxu0 %v1107_v5 }
  0xb0   : > { %vm588_vm7 = vcmp.eq.f32.partialorder %v1281_v37, %v563_v41  ;;  %vm469_vm8 = vcmp.eq.f32.partialorder %v1279_v36, %v444_v42  ;;  %887 = vmatpush3.msk.msra.mxu0 %vm605_vm6, %v1109_v40 }
  0xb1   : > { %vm604_vm9 = vmand %vm469_vm8, %vm588_vm7  ;;  %888 = vmatprep.subr.mxu0 %v1107_v5 }
  0xb2   : > { %889 = vmatpush3.msk.msra.mxu0 %vm604_vm9, %v1109_v40 }
  0xb3   : > { %v558_v43 = vpop.permute.xlu1 %557  ;;  %v439_v44 = vpop.permute.xlu0 %438  ;;  %890 = vmatprep.subr.mxu0 %v1107_v5 }
  0xb4   : > { %vm587_vm10 = vcmp.eq.f32.partialorder %v1281_v37, %v558_v43  ;;  %vm468_vm11 = vcmp.eq.f32.partialorder %v1279_v36, %v439_v44 }
  0xb5   : > { %vm603_vm12 = vmand %vm468_vm11, %vm587_vm10 }
  0xb6   : > { %891 = vmatpush3.msk.msra.mxu0 %vm603_vm12, %v1109_v40 }
  0xb7   : > { %v553_v45 = vpop.permute.xlu1 %552  ;;  %v434_v46 = vpop.permute.xlu0 %433  ;;  %892 = vmatprep.subr.mxu0 %v1107_v5 }
  0xb8   : > { %vm586_vm13 = vcmp.eq.f32.partialorder %v1281_v37, %v553_v45  ;;  %vm467_vm14 = vcmp.eq.f32.partialorder %v1279_v36, %v434_v46 }
  0xb9   : > { %vm602_vm15 = vmand %vm467_vm14, %vm586_vm13 }
  0xba   : > { %893 = vmatpush3.msk.msra.mxu0 %vm602_vm15, %v1109_v40 }
  0xbb   : > { %v548_v47 = vpop.permute.xlu1 %547  ;;  %v429_v48 = vpop.permute.xlu0 %428  ;;  %894 = vmatprep.subr.mxu0 %v1107_v5 }
  0xbc   : > { %vm585_vm0 = vcmp.eq.f32.partialorder %v1281_v37, %v548_v47  ;;  %vm466_vm1 = vcmp.eq.f32.partialorder %v1279_v36, %v429_v48 }
  0xbd   : > { %vm601_vm2 = vmand %vm466_vm1, %vm585_vm0 }
  0xbe   : > { %895 = vmatpush3.msk.msra.mxu0 %vm601_vm2, %v1109_v40 }
  0xbf   : > { %v543_v49 = vpop.permute.xlu1 %542  ;;  %v424_v50 = vpop.permute.xlu0 %423  ;;  %896 = vmatprep.subr.mxu0 %v1107_v5 }
  0xc0   : > { %vm584_vm3 = vcmp.eq.f32.partialorder %v1281_v37, %v543_v49  ;;  %vm465_vm4 = vcmp.eq.f32.partialorder %v1279_v36, %v424_v50 }
  0xc1   : > { %vm600_vm5 = vmand %vm465_vm4, %vm584_vm3 }
  0xc2   : > { %897 = vmatpush3.msk.msra.mxu0 %vm600_vm5, %v1109_v40 }
  0xc3   : > { %v538_v51 = vpop.permute.xlu1 %537  ;;  %v419_v52 = vpop.permute.xlu0 %418  ;;  %898 = vmatprep.subr.mxu0 %v1107_v5 }
  0xc4   : > { %vm583_vm6 = vcmp.eq.f32.partialorder %v1281_v37, %v538_v51  ;;  %vm464_vm7 = vcmp.eq.f32.partialorder %v1279_v36, %v419_v52 }
  0xc5   : > { %vm599_vm8 = vmand %vm464_vm7, %vm583_vm6 }
  0xc6   : > { %899 = vmatpush3.msk.msra.mxu0 %vm599_vm8, %v1109_v40 }
  0xc7   : > { %v533_v53 = vpop.permute.xlu1 %532  ;;  %v414_v54 = vpop.permute.xlu0 %413  ;;  %900 = vmatprep.subr.mxu0 %v1107_v5 }
  0xc8   : > { %vm582_vm9 = vcmp.eq.f32.partialorder %v1281_v37, %v533_v53  ;;  %vm463_vm10 = vcmp.eq.f32.partialorder %v1279_v36, %v414_v54 }
  0xc9   : > { %vm598_vm11 = vmand %vm463_vm10, %vm582_vm9 }
  0xca   : > { %901 = vmatpush3.msk.msra.mxu0 %vm598_vm11, %v1109_v40 }
  0xcb   : > { %v528_v55 = vpop.permute.xlu1 %527  ;;  %v409_v56 = vpop.permute.xlu0 %408  ;;  %902 = vmatprep.subr.mxu0 %v1107_v5 }
  0xcc   : > { %vm581_vm12 = vcmp.eq.f32.partialorder %v1281_v37, %v528_v55  ;;  %vm462_vm13 = vcmp.eq.f32.partialorder %v1279_v36, %v409_v56 }
  0xcd   : > { %vm597_vm14 = vmand %vm462_vm13, %vm581_vm12 }
  0xce   : > { %903 = vmatpush3.msk.msra.mxu0 %vm597_vm14, %v1109_v40 }
  0xcf   : > { %v523_v57 = vpop.permute.xlu1 %522  ;;  %v404_v58 = vpop.permute.xlu0 %403  ;;  %904 = vmatprep.subr.mxu0 %v1107_v5 }
  0xd0   : > { %vm580_vm15 = vcmp.eq.f32.partialorder %v1281_v37, %v523_v57  ;;  %vm461_vm0 = vcmp.eq.f32.partialorder %v1279_v36, %v404_v58 }
  0xd1   : > { %vm596_vm1 = vmand %vm461_vm0, %vm580_vm15 }
  0xd2   : > { %905 = vmatpush3.msk.msra.mxu0 %vm596_vm1, %v1109_v40 }
  0xd3   : > { %v518_v59 = vpop.permute.xlu1 %517  ;;  %v399_v60 = vpop.permute.xlu0 %398  ;;  %906 = vmatprep.subr.mxu0 %v1107_v5 }
  0xd4   : > { %vm579_vm2 = vcmp.eq.f32.partialorder %v1281_v37, %v518_v59  ;;  %vm460_vm3 = vcmp.eq.f32.partialorder %v1279_v36, %v399_v60 }
  0xd5   : > { %vm595_vm4 = vmand %vm460_vm3, %vm579_vm2 }
  0xd6   : > { %907 = vmatpush3.msk.msra.mxu0 %vm595_vm4, %v1109_v40 }
  0xd7   : > { %v513_v61 = vpop.permute.xlu1 %512  ;;  %v394_v62 = vpop.permute.xlu0 %393  ;;  %908 = vmatprep.subr.mxu0 %v1107_v5 }
  0xd8   : > { %vm578_vm5 = vcmp.eq.f32.partialorder %v1281_v37, %v513_v61  ;;  %vm459_vm6 = vcmp.eq.f32.partialorder %v1279_v36, %v394_v62 }
  0xd9   : > { %vm594_vm7 = vmand %vm459_vm6, %vm578_vm5 }
  0xda   : > { %909 = vmatpush3.msk.msra.mxu0 %vm594_vm7, %v1109_v40 }
  0xdb   : > { %v508_v63 = vpop.permute.xlu1 %507  ;;  %v389_v0 = vpop.permute.xlu0 %388  ;;  %910 = vmatprep.subr.mxu0 %v1107_v5 }
  0xdc   : > { %vm577_vm8 = vcmp.eq.f32.partialorder %v1281_v37, %v508_v63  ;;  %vm458_vm9 = vcmp.eq.f32.partialorder %v1279_v36, %v389_v0 }
  0xdd   : > { %vm593_vm10 = vmand %vm458_vm9, %vm577_vm8 }
  0xde   : > { %911 = vmatpush3.msk.msra.mxu0 %vm593_vm10, %v1109_v40 }
  0xdf   : > { %v503_v1 = vpop.permute.xlu1 %502  ;;  %v384_v2 = vpop.permute.xlu0 %383  ;;  %912 = vmatprep.subr.mxu0 %v1107_v5 }
  0xe0   : > { %vm576_vm11 = vcmp.eq.f32.partialorder %v1281_v37, %v503_v1  ;;  %vm457_vm12 = vcmp.eq.f32.partialorder %v1279_v36, %v384_v2 }
  0xe1   : > { %vm592_vm13 = vmand %vm457_vm12, %vm576_vm11 }
  0xe2   : > { %913 = vmatpush3.msk.msra.mxu0 %vm592_vm13, %v1109_v40 }
  0xe3   : > { %v498_v3 = vpop.permute.xlu1 %497  ;;  %v379_v4 = vpop.permute.xlu0 %378  ;;  %914 = vmatprep.subr.mxu0 %v1107_v5 }
  0xe4   : > { %vm575_vm14 = vcmp.eq.f32.partialorder %v1281_v37, %v498_v3  ;;  %vm456_vm15 = vcmp.eq.f32.partialorder %v1279_v36, %v379_v4 }
  0xe5   : > { %vm591_vm0 = vmand %vm456_vm15, %vm575_vm14 }
  0xe6   : > { %915 = vmatpush3.msk.msra.mxu0 %vm591_vm0, %v1109_v40 }
  0xe7   : > { %917 = vmatmul.mubr.f32.vlgmr.msra.gmra.mxu0 %v623_v6 }
 0x1a5   : > { %697 = sbr.rel (%p861_p7) target bundleno = 427 (0x1ab), region = 44 }
 0x1a7   : > { %v690_v7 = vpop.f32.mrf.mxu0 }
 0x1a9   : > { %v918_v8 = vpop.f32.mrf.mxu0 }
 0x1aa   : > { %698 = vst [vmem:[%s318_s25] sm:$0x3f] %v690_v7 }
 0x1ab PF: > { %p862_p9 = scmp.le.s32.totalorder %s1087_s28, 0 }
 0x1ad   : > { %702 = sbr.rel (%p862_p9) target bundleno = 438 (0x1b6), region = 48 }
 0x1b2   : > { %v703_v5 = vld [vmem:[%s318_s25] sm:$0x3f] }
 0x1b3   : > { %v704_v9 = vadd.f32 %v703_v5, %v690_v7 }
 0x1b5   : > { %705 = vst [vmem:[%s318_s25] sm:$0x3f] %v704_v9 }
 0x1b6 PF: > { %s864_s9 = sshll.u32 %s1091_s29, 7  ;;  %s720_s10 = sshll.u32 %s318_s25, 4  ;;  %s721_s10 = int_to_ptr.vmem [resolvable:$true] %s720_s10 }
 0x1b7   : > { %s718_s21 = scalar_lea.hbm %s1406_s6, %s864_s9  ;;  %s707_s18 = scalar_lea.sflag [#allocation5], %s316_s20 }
 0x1b8   : > { %s1009_s19 = scalar_lea.vmem %s721_s10, 128  ;;  %s1110_s28 = smov [#allocation4]  }
 0x1b9   : > { %p1010_p10 = scmp.ne.s32.totalorder %s721_s10, %s1009_s19  ;;  %s1013_s22 = sshll.u32 %s1110_s28, 4  ;;  %s1014_s22 = int_to_ptr.vmem [resolvable:$false] %s1013_s22 }
 0x1ba   : > { %s1015_s23 = scalar_lea.vmem %s1014_s22, 256  ;;  %p1016_p13 = scmp.lt.s32.totalorder %s721_s10, %s1014_s22 }
 0x1bb   : > { %p1011_p11 = pnand %p1010_p10, %p1198_p8  ;;  %p1017_p1 = scmp.lt.s32.totalorder %s1015_s23, %s1009_s19 }
 0x1bd   : > { %p1012_p12 = pneg %p1011_p11  ;;  %p1018_p2 = por %p1017_p1, %p1016_p13 }
 0x1bf   : > { %p1019_p3 = pnand %p1018_p2, %p1012_p12 }
 0x1c1   : > { %1022 = shalt.err (!%p1019_p3)
}
 0x1c2   : > { %s1023_s29 = scalar_lea.hbm %s718_s21, 128  ;;  %s1027_s25 = scalar_lea.hbm %s1406_s6, 256 }
 0x1c3   : > { %p1024_p4 = scmp.ne.s32.totalorder %s718_s21, %s1023_s29  ;;  %p1028_p7 = scmp.lt.s32.totalorder %s718_s21, %s1406_s6 }
 0x1c4   : > { %p1029_p9 = scmp.lt.s32.totalorder %s1027_s25, %s1023_s29 }
 0x1c5   : > { %p1025_p5 = pnand %p1024_p4, %p1198_p8 }
 0x1c6   : > { %p1030_p10 = por %p1029_p9, %p1028_p7 }
 0x1c7   : > { %p1026_p6 = pneg %p1025_p5 }
 0x1c9   : > { %p1031_p11 = pnand %p1030_p10, %p1026_p6 }
 0x1cb   : > { %1034 = shalt.err (!%p1031_p11)
}
 0x1cc   : > { %919 = dma.vmem_to_hbm [thread:$0]  (%p1198_p8), %s721_s10, 128, %s718_s21, %s707_s18  }
 0x1cd PF: > { %p925_p12 = scmp.ge.s32.totalorder %s1103_s8, 2  ;;  %s732_s16 = sand.u32 1, %s1075_s26  }
 0x1ce   : > { %s733_s19 = scalar_lea.sflag [#allocation5], %s732_s16 }
 0x1cf   : > { %p922_p13 = pnand %p925_p12, %p1208_p0 }
 0x1d1   : > { %p923_p1 = pneg %p922_p13 }
 0x1d3   : > { %1070 = dma.done.wait (%p923_p1), %s733_s19, 128  }
 0x1d4   : > { %1072 = vsyncadd (%p923_p1), %s733_s19, 4294967168  ;;  %s25_s8 = sadd.s32 1, %s1103_s8   ;;  %s1409_s26 = smov %s1079_s27 }
 0x1d5   : > { %p22_p2 = scmp.ge.s32.totalorder %s25_s8, 6   ;;  %s1410_s27 = smov %s1083_s0 }
 0x1d6   : > { %s1411_s0 = smov %s1216_s17  ;;  %s1412_s28 = smov %s1095_s30 }
 0x1d7   : > { %s1413_s29 = smov %s1099_s7  ;;  %s1414_s30 = smov %s1417_s11 }
 0x1d8   : > { %s1415_s7 = smov %s1421_s12  ;;  %24 = sbr.rel (!%p22_p2) target bundleno = 20 (0x14), region = 95 }
 0x1dd   :  { %738 = vsyncpa [#allocation5], 1 }
 0x1de   :  { %740 = vsyncpa [#allocation5 + $0x1], 1 }

</bundles_post_ra>
